<compile_context>
chip_gen: v6e
topology: v6e:2x2x1
jax: 0.10.0
libtpu: 0.0.40
codegen_flags: <defaults>
</compile_context>

<pallas_src>
import functools

import jax
import jax.numpy as jnp
from jax import lax
from jax.experimental import pallas as pl
from jax.experimental.pallas import tpu as pltpu

_LANES = 128


def _round_up(x, m):
    return ((x + m - 1) // m) * m


def _rep_lanes(x, n):
    """Broadcast a (rows, 128) lane-replicated tile to (rows, n) lanes."""
    cur = x.shape[-1]
    if n == cur:
        return x
    if n < cur:
        return x[:, :n]                       # static lane slice
    assert n % cur == 0
    return jnp.tile(x, (1, n // cur))         # whole-vreg copies, no shuffles


def _flash_attention_kernel(q_ref, k_ref, v_ref, o_ref, m_sc, l_sc, acc_sc, *,
                            scale, lk, tk, mask_keys, mm_dtype):
    ki = pl.program_id(2)

    @pl.when(ki == 0)
    def _init():
        m_sc[...] = jnp.full_like(m_sc, -jnp.inf)
        l_sc[...] = jnp.zeros_like(l_sc)
        acc_sc[...] = jnp.zeros_like(acc_sc)

    # Fold 1/sqrt(dk) into the (TQ, Dp) Q tile instead of the (TQ, TK) scores.
    q = q_ref[0] * scale
    k = k_ref[0]
    v = v_ref[0]
    if mm_dtype is not None:          # static: bf16 MXU path for f32 inputs
        q = q.astype(mm_dtype)
        k = k.astype(mm_dtype)
        v = v.astype(mm_dtype)

    # scores = (Q/sqrt(dk)) . K^T — contract feature dims, f32 accumulation.
    s = lax.dot_general(
        q, k,
        dimension_numbers=(((1,), (1,)), ((), ())),
        preferred_element_type=jnp.float32,
    )                                                            # (TQ, TK) f32

    dv = acc_sc.shape[-1]

    def update(scores):
        m_prev = m_sc[...]                                       # (TQ, 128)
        l_prev = l_sc[...]
        m_curr = jnp.max(scores, axis=-1, keepdims=True)         # (TQ, 1)
        m_next = jnp.maximum(m_prev, m_curr)                     # (TQ, 128)
        alpha = jnp.exp(m_prev - m_next)                         # (TQ, 128)
        p = jnp.exp(scores - _rep_lanes(m_next, scores.shape[-1]))  # (TQ, TK)
        l_sc[...] = alpha * l_prev + jnp.sum(p, axis=-1, keepdims=True)
        pv = jnp.dot(p.astype(v.dtype), v, preferred_element_type=jnp.float32)
        acc_sc[...] = _rep_lanes(alpha, dv) * acc_sc[...] + pv
        m_sc[...] = m_next

    if mask_keys:
        # Padded keys can only live in the last Lk tile; keep the mask out of
        # every other step's inner loop.
        last = pl.num_programs(2) - 1

        @pl.when(ki != last)
        def _unmasked():
            update(s)

        @pl.when(ki == last)
        def _masked():
            key_idx = ki * tk + lax.broadcasted_iota(jnp.int32, s.shape, 1)
            update(jnp.where(key_idx < lk, s, jnp.float32(-1e30)))
    else:
        update(s)

    @pl.when(ki == pl.num_programs(2) - 1)
    def _finalize():
        inv_l = 1.0 / l_sc[...]              # exact; runs once per Q tile
        o_ref[0] = (acc_sc[...] * _rep_lanes(inv_l, dv)).astype(o_ref.dtype)


def attention(Q, K, V, dk=128, *, tq=1024, tk=512, matmul_dtype="auto"):
    """Pallas equivalent of Attention.forward(Q, K, V, dk)."""
    B, Lq, D = Q.shape
    Bk, Lk, Dk = K.shape
    Bv, Lkv, Dv = V.shape
    assert B == Bk == Bv and D == Dk and Lk == Lkv

    itemsize = jnp.dtype(Q.dtype).itemsize
    # Sublane multiple for the input dtype (f32: 8, bf16/f16: 16, 8-bit: 32).
    sub = {4: 8, 2: 16, 1: 32}.get(itemsize, 8)

    # f32 matmul is MXU-emulated on all generations; run the two matmuls in
    # bf16 (f32 accumulation, f32 softmax) unless the caller overrides.
    if matmul_dtype == "auto":
        mm_dtype = jnp.bfloat16 if Q.dtype == jnp.dtype(jnp.float32) else None
    else:
        mm_dtype = matmul_dtype

    # Feature dims -> multiples of 128 lanes (zero Q/K columns add 0 to the
    # scores; zero V columns give zero output columns that are sliced off).
    Dp = _round_up(D, _LANES)
    Dvp = _round_up(Dv, _LANES)

    def pick_tile(req, length):
        full = _round_up(length, sub)                 # whole (padded) sequence
        t = max(_LANES, _round_up(req, _LANES))       # requested, lane-rounded
        return full if full <= t else t

    TQ = pick_tile(tq, Lq)
    TK = pick_tile(tk, Lk)

    # v7x megacore: with B == 1 keep at least two Q tiles so both TensorCores
    # get work (the qi axis is "parallel").
    if B == 1 and Lq >= 2 * _LANES and TQ >= _round_up(Lq, sub):
        TQ = min(TQ, _round_up((Lq + 1) // 2, _LANES))

    Lqp = _round_up(Lq, TQ)
    Lkp = _round_up(Lk, TK)

    Qp = jnp.pad(Q, ((0, 0), (0, Lqp - Lq), (0, Dp - D))) if (Lqp != Lq or Dp != D) else Q
    Kp = jnp.pad(K, ((0, 0), (0, Lkp - Lk), (0, Dp - D))) if (Lkp != Lk or Dp != D) else K
    Vp = jnp.pad(V, ((0, 0), (0, Lkp - Lk), (0, Dvp - Dv))) if (Lkp != Lk or Dvp != Dv) else V

    grid = (B, Lqp // TQ, Lkp // TK)
    scale = 1.0 / (float(dk) ** 0.5)   # matches the PyTorch module: dk arg, not D

    kernel = functools.partial(
        _flash_attention_kernel,
        scale=scale, lk=Lk, tk=TK, mask_keys=(Lkp != Lk), mm_dtype=mm_dtype,
    )

    # VMEM budget: double-buffered I/O blocks + f32 scratch + score/p temps,
    # clamped to ~75% of the queried per-core VMEM capacity (generation-aware).
    est = (
        2 * itemsize * (TQ * Dp + TK * (Dp + Dvp) + TQ * Dvp)
        + 4 * TQ * (Dvp + 2 * _LANES)
        + 4 * 4 * TQ * TK
        + (4 << 20)
    )
    cap = 64 << 20
    try:
        cap = int(getattr(pltpu.get_tpu_info(), "vmem_capacity_bytes", cap))
    except Exception:
        pass
    vmem_bytes = int(min(max(est, 32 << 20), (cap * 3) // 4))

    out = pl.pallas_call(
        kernel,
        out_shape=jax.ShapeDtypeStruct((B, Lqp, Dvp), Q.dtype),
        grid_spec=pltpu.PrefetchScalarGridSpec(
            num_scalar_prefetch=0,
            grid=grid,
            in_specs=[
                pl.BlockSpec((1, TQ, Dp), lambda b, qi, ki: (b, qi, 0)),
                pl.BlockSpec((1, TK, Dp), lambda b, qi, ki: (b, ki, 0)),
                pl.BlockSpec((1, TK, Dvp), lambda b, qi, ki: (b, ki, 0)),
            ],
            out_specs=pl.BlockSpec((1, TQ, Dvp), lambda b, qi, ki: (b, qi, 0)),
            scratch_shapes=[
                pltpu.VMEM((TQ, _LANES), jnp.float32),  # running max m (lane-replicated)
                pltpu.VMEM((TQ, _LANES), jnp.float32),  # running sum l (lane-replicated)
                pltpu.VMEM((TQ, Dvp), jnp.float32),     # running P@V accumulator
            ],
        ),
        compiler_params=pltpu.CompilerParams(
            dimension_semantics=("parallel", "parallel", "arbitrary"),
            vmem_limit_bytes=vmem_bytes,
        ),
    )(Qp, Kp, Vp)

    if Lqp != Lq or Dvp != Dv:
        out = out[:, :Lq, :Dv]
    return out


def _reference(Q, K, V, dk=128):
    s = jnp.einsum("bqd,bkd->bqk", Q, K) / (dk ** 0.5)
    w = jax.nn.softmax(s, axis=-1)
    return jnp.einsum("bqk,bkd->bqd", w, V)


if __name__ == "__main__":
    key = jax.random.PRNGKey(0)
    kq, kk, kv = jax.random.split(key, 3)

    B, Lq, Lk, D = 2, 8, 8, 32   # small shapes consistent with torch.bmm usage
    Q = jax.random.normal(kq, (B, Lq, D), dtype=jnp.float32)
    K = jax.random.normal(kk, (B, Lk, D), dtype=jnp.float32)
    V = jax.random.normal(kv, (B, Lk, D), dtype=jnp.float32)

    out = attention(Q, K, V, dk=128)
    out = jax.block_until_ready(out)

    ref = _reference(Q, K, V, dk=128)
    assert out.shape == (B, Lq, D), out.shape
    # Tolerance bounded by the bf16 MXU operands (softmax and accumulation are
    # f32; the final normalization uses an exact reciprocal).
    err = float(jnp.max(jnp.abs(out - ref)))
    assert jnp.allclose(out, ref, atol=2e-2, rtol=2e-2), err

    print("KERNEL_OK")
</pallas_src>

<mosaic_0001>
module attributes {stable_mosaic.version = 11 : i64} {
  func.func @_flash_attention_kernel(%arg0: i32, %arg1: i32, %arg2: i32, %arg3: memref<1x8x128xf32, #tpu.memory_space<vmem>>, %arg4: memref<1x8x128xf32, #tpu.memory_space<vmem>>, %arg5: memref<1x8x128xf32, #tpu.memory_space<vmem>>, %arg6: memref<1x8x128xf32, #tpu.memory_space<vmem>>, %arg7: memref<8x128xf32, #tpu.memory_space<vmem>>, %arg8: memref<8x128xf32, #tpu.memory_space<vmem>>, %arg9: memref<8x128xf32, #tpu.memory_space<vmem>>) attributes {dimension_semantics = [#tpu.dimension_semantics<parallel>, #tpu.dimension_semantics<parallel>, #tpu.dimension_semantics<arbitrary>], iteration_bounds = array<i64: 2, 1, 1>, scalar_prefetch = 0 : i64, scratch_operands = 3 : i64, tpu.core_type = #tpu.core_type<tc>, window_params = [{transform_indices = @transform_0, window_bounds = array<i64: 1, 8, 128>}, {transform_indices = @transform_1, window_bounds = array<i64: 1, 8, 128>}, {transform_indices = @transform_2, window_bounds = array<i64: 1, 8, 128>}, {transform_indices = @transform_3, window_bounds = array<i64: 1, 8, 128>}]} {
    %c0_i32 = arith.constant 0 : i32
    %0 = arith.cmpi eq, %arg2, %c0_i32 : i32
    %1 = arith.extui %0 : i1 to i32
    %c0_i32_0 = arith.constant 0 : i32
    %2 = arith.cmpi ne, %1, %c0_i32_0 : i32
    scf.if %2 {
      %cst_27 = arith.constant 0xFF800000 : f32
      %42 = vector.broadcast %cst_27 : f32 to vector<8x128xf32>
      %c0_28 = arith.constant 0 : index
      %c0_29 = arith.constant 0 : index
      %43 = vector.load %arg7[%c0_28, %c0_29] : memref<8x128xf32, #tpu.memory_space<vmem>>, vector<8x128xf32>
      tpu.vector_store %arg7[%c0_28, %c0_29], %42 {strides = array<i32>} : memref<8x128xf32, #tpu.memory_space<vmem>>, vector<8x128xf32>,
      %cst_30 = arith.constant 0.000000e+00 : f32
      %44 = vector.broadcast %cst_30 : f32 to vector<8x128xf32>
      %c0_31 = arith.constant 0 : index
      %c0_32 = arith.constant 0 : index
      %45 = vector.load %arg8[%c0_31, %c0_32] : memref<8x128xf32, #tpu.memory_space<vmem>>, vector<8x128xf32>
      tpu.vector_store %arg8[%c0_31, %c0_32], %44 {strides = array<i32>} : memref<8x128xf32, #tpu.memory_space<vmem>>, vector<8x128xf32>,
      %cst_33 = arith.constant 0.000000e+00 : f32
      %46 = vector.broadcast %cst_33 : f32 to vector<8x128xf32>
      %c0_34 = arith.constant 0 : index
      %c0_35 = arith.constant 0 : index
      %47 = vector.load %arg9[%c0_34, %c0_35] : memref<8x128xf32, #tpu.memory_space<vmem>>, vector<8x128xf32>
      tpu.vector_store %arg9[%c0_34, %c0_35], %46 {strides = array<i32>} : memref<8x128xf32, #tpu.memory_space<vmem>>, vector<8x128xf32>,
    } else {
    }
    %c0 = arith.constant 0 : index
    %c0_1 = arith.constant 0 : index
    %c0_2 = arith.constant 0 : index
    %3 = vector.load %arg3[%c0, %c0_1, %c0_2] : memref<1x8x128xf32, #tpu.memory_space<vmem>>, vector<1x8x128xf32>
    %4 = vector.shape_cast %3 : vector<1x8x128xf32> to vector<8x128xf32>
    %cst = arith.constant 0.0883883461 : f32
    %5 = vector.broadcast %cst : f32 to vector<8x128xf32>
    %6 = arith.mulf %4, %5 : vector<8x128xf32>
    %c0_3 = arith.constant 0 : index
    %c0_4 = arith.constant 0 : index
    %c0_5 = arith.constant 0 : index
    %7 = vector.load %arg4[%c0_3, %c0_4, %c0_5] : memref<1x8x128xf32, #tpu.memory_space<vmem>>, vector<1x8x128xf32>
    %8 = vector.shape_cast %7 : vector<1x8x128xf32> to vector<8x128xf32>
    %c0_6 = arith.constant 0 : index
    %c0_7 = arith.constant 0 : index
    %c0_8 = arith.constant 0 : index
    %9 = vector.load %arg5[%c0_6, %c0_7, %c0_8] : memref<1x8x128xf32, #tpu.memory_space<vmem>>, vector<1x8x128xf32>
    %10 = vector.shape_cast %9 : vector<1x8x128xf32> to vector<8x128xf32>
    %11 = arith.truncf %6 : vector<8x128xf32> to vector<8x128xbf16>
    %12 = arith.truncf %8 : vector<8x128xf32> to vector<8x128xbf16>
    %13 = arith.truncf %10 : vector<8x128xf32> to vector<8x128xbf16>
    %cst_9 = arith.constant dense<0.000000e+00> : vector<8x8xf32>
    %14 = tpu.matmul %11, %12, %cst_9 {dimension_numbers = #tpu.dot_dimension_numbers<[1], [1], [0], [0], [0, 0, 1, 0], [], []>} : vector<8x128xbf16>, vector<8x128xbf16>, vector<8x8xf32> -> vector<8x8xf32>
    %c0_10 = arith.constant 0 : index
    %c0_11 = arith.constant 0 : index
    %15 = vector.load %arg7[%c0_10, %c0_11] : memref<8x128xf32, #tpu.memory_space<vmem>>, vector<8x128xf32>
    %c0_12 = arith.constant 0 : index
    %c0_13 = arith.constant 0 : index
    %16 = vector.load %arg8[%c0_12, %c0_13] : memref<8x128xf32, #tpu.memory_space<vmem>>, vector<8x128xf32>
    %cst_14 = arith.constant dense<0xFF800000> : vector<8xf32>
    %17 = vector.multi_reduction <maximumf>, %14, %cst_14 [1] : vector<8x8xf32> to vector<8xf32>
    %18 = vector.shape_cast %17 : vector<8xf32> to vector<8x1xf32>
    %19 = vector.broadcast %18 : vector<8x1xf32> to vector<8x128xf32>
    %20 = arith.maximumf %15, %19 : vector<8x128xf32>
    %21 = arith.subf %15, %20 : vector<8x128xf32>
    %22 = math.exp %21 : vector<8x128xf32>
    %23 = vector.extract_strided_slice %20 {offsets = [0, 0], sizes = [8, 8], strides = [1, 1]} : vector<8x128xf32> to vector<8x8xf32>
    %24 = arith.subf %14, %23 : vector<8x8xf32>
    %25 = math.exp %24 : vector<8x8xf32>
    %26 = arith.mulf %22, %16 : vector<8x128xf32>
    %cst_15 = arith.constant dense<0.000000e+00> : vector<8xf32>
    %27 = vector.multi_reduction <add>, %25, %cst_15 [1] : vector<8x8xf32> to vector<8xf32>
    %28 = vector.shape_cast %27 : vector<8xf32> to vector<8x1xf32>
    %29 = vector.broadcast %28 : vector<8x1xf32> to vector<8x128xf32>
    %30 = arith.addf %26, %29 : vector<8x128xf32>
    %c0_16 = arith.constant 0 : index
    %c0_17 = arith.constant 0 : index
    %31 = vector.load %arg8[%c0_16, %c0_17] : memref<8x128xf32, #tpu.memory_space<vmem>>, vector<8x128xf32>
    tpu.vector_store %arg8[%c0_16, %c0_17], %30 {strides = array<i32>} : memref<8x128xf32, #tpu.memory_space<vmem>>, vector<8x128xf32>,
    %32 = arith.truncf %25 : vector<8x8xf32> to vector<8x8xbf16>
    %cst_18 = arith.constant dense<0.000000e+00> : vector<8x128xf32>
    %33 = tpu.matmul %32, %13, %cst_18 {dimension_numbers = #tpu.dot_dimension_numbers<[1], [0], [0], [1], [0, 0, 1, 1], [], []>} : vector<8x8xbf16>, vector<8x128xbf16>, vector<8x128xf32> -> vector<8x128xf32>
    %c0_19 = arith.constant 0 : index
    %c0_20 = arith.constant 0 : index
    %34 = vector.load %arg9[%c0_19, %c0_20] : memref<8x128xf32, #tpu.memory_space<vmem>>, vector<8x128xf32>
    %35 = arith.mulf %22, %34 : vector<8x128xf32>
    %36 = arith.addf %35, %33 : vector<8x128xf32>
    %c0_21 = arith.constant 0 : index
    %c0_22 = arith.constant 0 : index
    %37 = vector.load %arg9[%c0_21, %c0_22] : memref<8x128xf32, #tpu.memory_space<vmem>>, vector<8x128xf32>
    tpu.vector_store %arg9[%c0_21, %c0_22], %36 {strides = array<i32>} : memref<8x128xf32, #tpu.memory_space<vmem>>, vector<8x128xf32>,
    %c0_23 = arith.constant 0 : index
    %c0_24 = arith.constant 0 : index
    %38 = vector.load %arg7[%c0_23, %c0_24] : memref<8x128xf32, #tpu.memory_space<vmem>>, vector<8x128xf32>
    tpu.vector_store %arg7[%c0_23, %c0_24], %20 {strides = array<i32>} : memref<8x128xf32, #tpu.memory_space<vmem>>, vector<8x128xf32>,
    %c0_i32_25 = arith.constant 0 : i32
    %39 = arith.cmpi eq, %arg2, %c0_i32_25 : i32
    %40 = arith.extui %39 : i1 to i32
    %c0_i32_26 = arith.constant 0 : i32
    %41 = arith.cmpi ne, %40, %c0_i32_26 : i32
    scf.if %41 {
      %c0_27 = arith.constant 0 : index
      %c0_28 = arith.constant 0 : index
      %42 = vector.load %arg8[%c0_27, %c0_28] : memref<8x128xf32, #tpu.memory_space<vmem>>, vector<8x128xf32>
      %cst_29 = arith.constant 1.000000e+00 : f32
      %43 = vector.broadcast %cst_29 : f32 to vector<8x128xf32>
      %44 = arith.divf %43, %42 : vector<8x128xf32>
      %c0_30 = arith.constant 0 : index
      %c0_31 = arith.constant 0 : index
      %45 = vector.load %arg9[%c0_30, %c0_31] : memref<8x128xf32, #tpu.memory_space<vmem>>, vector<8x128xf32>
      %46 = arith.mulf %45, %44 : vector<8x128xf32>
      %c0_32 = arith.constant 0 : index
      %c0_33 = arith.constant 0 : index
      %c0_34 = arith.constant 0 : index
      %47 = vector.load %arg6[%c0_32, %c0_33, %c0_34] : memref<1x8x128xf32, #tpu.memory_space<vmem>>, vector<1x8x128xf32>
      %48 = vector.shape_cast %47 : vector<1x8x128xf32> to vector<8x128xf32>
      %49 = vector.shape_cast %46 : vector<8x128xf32> to vector<1x8x128xf32>
      tpu.vector_store %arg6[%c0_32, %c0_33, %c0_34], %49 {strides = array<i32>} : memref<1x8x128xf32, #tpu.memory_space<vmem>>, vector<1x8x128xf32>,
    } else {
    }
    return
  }
  func.func @transform_0(%arg0: i32, %arg1: i32, %arg2: i32) -> (i32, i32, i32) {
    %c0_i32 = arith.constant 0 : i32
    %c0_i32_0 = arith.constant 0 : i32
    return %arg0, %arg1, %c0_i32 : i32, i32, i32
  }
  func.func @transform_1(%arg0: i32, %arg1: i32, %arg2: i32) -> (i32, i32, i32) {
    %c0_i32 = arith.constant 0 : i32
    %c0_i32_0 = arith.constant 0 : i32
    return %arg0, %arg2, %c0_i32 : i32, i32, i32
  }
  func.func @transform_2(%arg0: i32, %arg1: i32, %arg2: i32) -> (i32, i32, i32) {
    %c0_i32 = arith.constant 0 : i32
    %c0_i32_0 = arith.constant 0 : i32
    return %arg0, %arg2, %c0_i32 : i32, i32, i32
  }
  func.func @transform_3(%arg0: i32, %arg1: i32, %arg2: i32) -> (i32, i32, i32) {
    %c0_i32 = arith.constant 0 : i32
    %c0_i32_0 = arith.constant 0 : i32
    return %arg0, %arg1, %c0_i32 : i32, i32, i32
  }
}

</mosaic_0001>

<bundles_post_ra>
// kernel: tpu_custom_call.1
= control target key start
LH: loop header
LB: loop body
LE: loop exit
PB: predicated region body
PF: predicated region fallthrough
CT: control target
= control target key end

     0   :  { %s1091_s0 = inlined_call_operand.hbm [shape: f32[2,8,128], index: 0, kind: input, shape index: {}]   ;;  %s1092_s1 = inlined_call_operand.hbm [shape: f32[2,8,128], index: 1, kind: input, shape index: {}]   ;;  %s1093_s2 = inlined_call_operand.hbm [shape: f32[2,8,128], index: 2, kind: input, shape index: {}]   ;;  %s1094_s3 = inlined_call_operand.hbm [shape: f32[2,8,128], index: 3, kind: output, shape index: {}]  }
   0x1   :  { %1098 = sst [smem:[#allocation17_spill]] %s1092_s1 }
   0x2   :  { %8 = vsyncpa [#allocation6], 0 }
   0x3   :  { %10 = vsyncpa [#allocation6 + $0x1], 0 }
   0x4   :  { %11 = vsyncpa [#allocation9], 0 }
   0x5   :  { %13 = vsyncpa [#allocation9 + $0x1], 0 }
   0x6   :  { %14 = vsyncpa [#allocation7], 0 }
   0x7   :  { %16 = vsyncpa [#allocation7 + $0x1], 0  ;;  %s878_s12 = smov 0   ;;  %s880_s13 = smov 0  }
   0x8   :  { %s882_s14 = smov 0   ;;  %s884_s15 = smov 0  }
   0x9   :  { %s886_s16 = smov 0   ;;  %s888_s17 = smov 0  }
   0xa LB: > { %1099 = sst [smem:[#allocation15_spill]] %s846_s16  ;;  %s909_s18 = sadd.s32 4294967295, %s850_s17   ;;  %s850_s17 = sphi %s888_s17, %s22_s17   ;;  %s846_s16 = sphi %s886_s16, %s1111_s16   ;;  %s842_s15 = sphi %s884_s15, %s1110_s15   ;;  %s838_s14 = sphi %s882_s14, %s1114_s14   ;;  %s834_s13 = sphi %s880_s13, %s1113_s13   ;;  %s830_s12 = sphi %s878_s12, %s1112_s12  }
   0xb   : > { %s567_s19 = sadd.s32 4294967294, %s850_s17   ;;  %s41_s20 = sadd.s32 1, %s846_s16 }
   0xc   : > { %s50_s21 = sadd.s32 1, %s838_s14  ;;  %p43_p0 = scmp.ge.s32.totalorder %s41_s20, 2 }
   0xd   : > { %p57_p1 = scmp.ne.s32.totalorder %s838_s14, %s834_s13  ;;  %p58_p2 = scmp.eq.s32.totalorder %s850_s17, 0 }
   0xe   : > { %p63_p3 = scmp.ne.s32.totalorder %s834_s13, %s830_s12  ;;  %s1116_s20 = smov (%p43_p0, %s41_s20), 0 }
   0xf   : > { %1100 = sst [smem:[#allocation16_spill]] %s1116_s20  ;;  %p921_p4 = por %p58_p2, %p57_p1 }
  0x10   : > { %p64_p5 = scmp.eq.s32.totalorder %s909_s18, 0  ;;  %s45_s23 = ssub.s32 %s846_s16, %s1116_s20 }
  0x11   : > { %p145_p6 = scmp.eq.s32.totalorder %s909_s18, 1  ;;  %p48_p7 = scmp.eq.s32.totalorder %s45_s23, 0 }
  0x12   : > { %p929_p8 = por %p64_p5, %p63_p3  ;;  %p151_p10 = scmp.eq.s32.totalorder %s567_s19, 1 }
  0x13   : > { %p933_p9 = por %p145_p6, %p57_p1  ;;  %p624_p13 = scmp.lt.s32.totalorder %s850_s17, 2 }
  0x14   : > { %s938_s26 = scalar_select %p48_p7, %s838_s14, %s50_s21  }
  0x15   : > { %p940_p11 = por %p151_p10, %p63_p3  ;;  %s1095_s28 = sand.u32 1, %s838_s14  }
  0x16   : > { %s949_s29 = sshll.u32 %s1095_s28, 3  ;;  %s952_s30 = sshll.u32 %s846_s16, 7 }
  0x17   : > { %p956_p0 = pnand %p624_p13, %p921_p4  ;;  %s190_s5 = sand.u32 1, %s850_s17  }
  0x18   : > { %s1106_s1 = sld [smem:[#allocation17_spill]]  ;;  %s194_s9 = scalar_lea.vmem [#allocation8], %s949_s29 }
  0x19   : > { %s202_s10 = sshll.u32 %s194_s9, 4  ;;  %p576_p1 = scmp.ge.s32.totalorder %s850_s17, 1  ;;  %s203_s10 = int_to_ptr.vmem [resolvable:$true] %s202_s10 }
  0x1a   : > { %p226_p2 = scmp.lt.s32.totalorder %s850_s17, 3  ;;  %s968_s11 = scalar_lea.sflag [#allocation9], %s190_s5 }
  0x1b   : > { %p684_p3 = pneg %p956_p0  ;;  %s695_s19 = scalar_lea.vmem %s203_s10, 128 }
  0x1c   : > { %p696_p4 = scmp.ne.s32.totalorder %s203_s10, %s695_s19  ;;  %s852_s21 = smov [#allocation8]  }
  0x1d   : > { %s700_s22 = sshll.u32 %s852_s21, 4  ;;  %s701_s22 = int_to_ptr.vmem [resolvable:$false] %s700_s22 }
  0x1e   : > { %s200_s8 = scalar_lea.hbm %s1106_s1, %s952_s30  ;;  %p698_p5 = pnand %p696_p4, %p684_p3 }
  0x1f   : > { %s702_s23 = scalar_lea.vmem %s701_s22, 256  ;;  %p703_p7 = scmp.lt.s32.totalorder %s203_s10, %s701_s22 }
  0x20   : > { %p699_p6 = pneg %p698_p5  ;;  %p704_p10 = scmp.lt.s32.totalorder %s702_s23, %s695_s19 }
  0x22   : > { %p705_p13 = por %p704_p10, %p703_p7 }
  0x24   : > { %p706_p12 = pnand %p705_p13, %p699_p6 }
  0x26   : > { %709 = shalt.err (!%p706_p12)
}
  0x27   : > { %616 = dma.hbm_to_vmem [thread:$0]  (!%p956_p0), %s200_s8, 128, %s203_s10, %s968_s11  }
  0x28   : > { %p982_p4 = pnand %p576_p1, %p226_p2  ;;  %s181_s9 = scalar_lea.hbm %s1091_s0, %s952_s30 }
  0x29   : > { %s175_s19 = scalar_lea.vmem [#allocation5], %s949_s29  ;;  %s219_s28 = scalar_lea.hbm %s1093_s2, %s952_s30 }
  0x2a   : > { %s183_s21 = sshll.u32 %s175_s19, 4  ;;  %s1108_s1 = sand.u32 1, %s838_s14   ;;  %s184_s21 = int_to_ptr.vmem [resolvable:$true] %s183_s21 }
  0x2b   : > { %s172_s20 = scalar_lea.sflag [#allocation6], %s1108_s1  ;;  %s723_s8 = scalar_lea.vmem %s184_s21, 128 }
  0x2c   : > { %p724_p12 = scmp.ne.s32.totalorder %s184_s21, %s723_s8  ;;  %s853_s10 = smov [#allocation5]  }
  0x2d   : > { %s728_s16 = sshll.u32 %s853_s10, 4  ;;  %s729_s16 = int_to_ptr.vmem [resolvable:$false] %s728_s16 }
  0x2e   : > { %p726_p1 = pnand %p724_p12, %p684_p3  ;;  %s730_s6 = scalar_lea.vmem %s729_s16, 256 }
  0x2f   : > { %p731_p5 = scmp.lt.s32.totalorder %s184_s21, %s729_s16  ;;  %p732_p6 = scmp.lt.s32.totalorder %s730_s6, %s723_s8 }
  0x30   : > { %p727_p2 = pneg %p726_p1 }
  0x31   : > { %p733_p7 = por %p732_p6, %p731_p5 }
  0x33   : > { %p734_p10 = pnand %p733_p7, %p727_p2 }
  0x35   : > { %737 = shalt.err (!%p734_p10)
}
  0x36   : > { %613 = dma.hbm_to_vmem [thread:$0]  (!%p956_p0), %s181_s9, 128, %s184_s21, %s172_s20  }
  0x37   : > { %s213_s1 = scalar_lea.vmem [#allocation10], %s949_s29  ;;  %s854_s22 = smov [#allocation10]  }
  0x38   : > { %s221_s7 = sshll.u32 %s213_s1, 4  ;;  %s756_s16 = sshll.u32 %s854_s22, 4  ;;  %s222_s7 = int_to_ptr.vmem [resolvable:$true] %s221_s7  ;;  %s757_s16 = int_to_ptr.vmem [resolvable:$false] %s756_s16 }
  0x39   : > { %s751_s19 = scalar_lea.vmem %s222_s7, 128  ;;  %s758_s23 = scalar_lea.vmem %s757_s16, 256 }
  0x3a   : > { %p752_p13 = scmp.ne.s32.totalorder %s222_s7, %s751_s19  ;;  %p759_p2 = scmp.lt.s32.totalorder %s222_s7, %s757_s16 }
  0x3b   : > { %p760_p5 = scmp.lt.s32.totalorder %s758_s23, %s751_s19 }
  0x3c   : > { %p754_p12 = pnand %p752_p13, %p684_p3 }
  0x3d   : > { %p761_p6 = por %p760_p5, %p759_p2 }
  0x3e   : > { %p755_p1 = pneg %p754_p12 }
  0x40   : > { %p762_p7 = pnand %p761_p6, %p755_p1 }
  0x42   : > { %765 = shalt.err (!%p762_p7)
}
  0x43   : > { %619 = dma.hbm_to_vmem [thread:$0]  (!%p956_p0), %s219_s28, 128, %s222_s7, %s968_s11  }
  0x44   : > { %230 = sbr.rel (%p982_p4) target bundleno = 650 (0x28a), region = 32  ;;  %s1017_s9 = sand.u32 (!%p982_p4), 1, %s834_s13  }
  0x45   : > { %s1020_s21 = sshll.u32 (!%p982_p4), %s1017_s9, 3  ;;  %s233_s4 = scalar_lea.sflag (!%p982_p4), [#allocation6], %s1017_s9 }
  0x46   : > { %s236_s8 = scalar_lea.vmem (!%p982_p4), [#allocation5], %s1020_s21 }
  0x49   : > { %817 = dma.done.wait (%p929_p8), %s233_s4, 128  }
  0x4a   : > { %819 = vsyncadd (%p929_p8), %s233_s4, 4294967168  ;;  %s241_s28 = sand.u32 1, %s909_s18   ;;  %s245_s11 = scalar_lea.vmem [#allocation8], %s1020_s21 }
  0x4b   : > { %s242_s30 = scalar_lea.sflag [#allocation9], %s241_s28 }
  0x4c   : > { %821 = dma.done.wait (%p929_p8), %s242_s30, 256  }
  0x4d   : > { %823 = vsyncadd (%p929_p8), %s242_s30, 4294967040  ;;  %v855_v0 = vmov 0.0   ;;  %vm856_vm0 = vmmov 0   ;;  %v297_v1 = vld [vmem:[%s245_s11] sm:$0xff]  ;;  %v295_v2 = vld [vmem:[%s236_s8] sm:$0xff]  ;;  %vm344_vm1 = vcmask 64512  }
  0x4e   : > { %590 = vmatprep.subr.bf16.mxu0 %v855_v0  ;;  %592 = vmatprep.mubr.msk.bf16.mxu0 %vm856_vm0, %v855_v0  ;;  %v300_v3 = vpack.c.bf16 %v297_v1, %v297_v1  ;;  %v296_v4 = vmul.f32 0.088388346, %v295_v2  ;;  %s254_s18 = scalar_lea.vmem [#allocation10], %s1020_s21  ;;  %vm365_vm2 = vcmask 1043456   ;;  %s583_s24 = sshll.u32 %s842_s15, 7 }
  0x4f   : > { %596 = vmatprep.subr.bf16.mxu1 %v855_v0  ;;  %598 = vmatprep.mubr.msk.bf16.mxu1 %vm856_vm0, %v855_v0  ;;  %v298_v11 = vld [vmem:[%s254_s18] sm:$0xff]  ;;  %s286_s5 = scalar_lea.vmem [#allocation11], %s1020_s21  ;;  %s1043_s7 = scalar_lea.hbm %s1094_s3, %s583_s24 }
  0x50   : > { %591 = vmatpush3.bf16.xpose.msra.mxu0 %v300_v3  ;;  %v299_v5 = vpack.c.bf16 %v296_v4, %v296_v4  ;;  %v301_v12 = vpack.c.bf16 %v298_v11, %v298_v11  ;;  %s438_s10 = sshll.u32 %s286_s5, 4  ;;  %s424_s15 = scalar_lea.sflag [#allocation7], %s1017_s9  ;;  %s1045_s10 = int_to_ptr.vmem [resolvable:$true] %s438_s10 }
  0x51   : > { %s766_s19 = scalar_lea.vmem %s1045_s10, 128  ;;  %s857_s22 = smov [#allocation11]  }
  0x52   : > { %v367_v13 = vsel %vm365_vm2, %v301_v12, 0  ;;  %p767_p8 = scmp.ne.s32.totalorder %s1045_s10, %s766_s19  ;;  %s770_s16 = sshll.u32 %s857_s22, 4  ;;  %s771_s16 = int_to_ptr.vmem [resolvable:$false] %s770_s16 }
  0x53   : > { %597 = vmatpush3.bf16.msra.mxu1 %v367_v13  ;;  %s772_s23 = scalar_lea.vmem %s771_s16, 256  ;;  %p773_p4 = scmp.lt.s32.totalorder %s1045_s10, %s771_s16 }
  0x54   : > { %p768_p0 = pnand %p767_p8, %p933_p9  ;;  %p774_p10 = scmp.lt.s32.totalorder %s772_s23, %s766_s19 }
  0x56   : > { %p769_p3 = pneg %p768_p0  ;;  %p775_p13 = por %p774_p10, %p773_p4 }
  0x57   : > { %593 = vmatmul.mubr.bf16.vlgmr.msra.gmra.mxu0 %v299_v5 }
  0x58   : > { %p776_p12 = pnand %p775_p13, %p769_p3 }
 0x117   : > { %v336_v6 = vpop.f32.mrf.mxu0 }
 0x118   : > { %v345_v7 = vsel %vm344_vm1, %v336_v6, -inf }
 0x119   : > { %346 = vmax.xlane.f32.xlu0 %v345_v7  ;;  %v594_v8 = vpop.f32.mrf.mxu0 }
 0x11b   : > { %v339_v9 = vpop.f32.mrf.mxu0 }
 0x11d   : > { %v595_v10 = vpop.f32.mrf.mxu0 }
 0x1a2   : > { %v347_v14 = vpop.xlane.xlu0 %346 }
 0x1a3   : > { %v352_v15 = vsub.f32 %v336_v6, %v347_v14  ;;  %v349_v20 = vsub.f32 -inf, %v347_v14 }
 0x1a5   : > { %v353_v16 = vmul.f32 1.442695, %v352_v15  ;;  %v350_v21 = vmul.f32 1.442695, %v349_v20 }
 0x1a7   : > { %676 = vpow2.f32 %v353_v16 }
 0x1a8   : > { %678 = vpow2.f32 %v350_v21 }
 0x1b4   : > { %v677_v17 = vpop.eup %676 }
 0x1b5   : > { %v356_v18 = vsel %vm344_vm1, %v677_v17, 0.0  ;;  %v361_v19 = vpack.c.bf16 %v677_v17, %v677_v17  ;;  %v679_v22 = vpop.eup %678 }
 0x1b6   : > { %357 = vadd.xlane.f32.xlu0 %v356_v18  ;;  %v355_v24 = vmul.f32 0.0, %v679_v22 }
 0x1b7   : > { %599 = vmatmul.mubr.msk.bf16.vlgmr.msra.gmra.mxu1 %vm344_vm1, %v361_v19 }
 0x23f   : > { %v358_v23 = vpop.xlane.xlu0 %357 }
 0x240   : > { %v359_v25 = vadd.f32 %v358_v23, %v355_v24 }
 0x242   : > { %680 = vrcp.f32 %v359_v25 }
 0x24f   : > { %v681_v28 = vpop.eup %680 }
 0x277   : > { %v403_v26 = vpop.f32.mrf.mxu1 }
 0x278   : > { %v411_v27 = vadd.f32 %v403_v26, %v355_v24 }
 0x279   : > { %v600_v29 = vpop.f32.mrf.mxu1 }
 0x27a   : > { %v421_v30 = vmul.f32 %v681_v28, %v411_v27 }
 0x27b   : > { %v406_v31 = vpop.f32.mrf.mxu1 }
 0x27c   : > { %422 = vst [vmem:[%s286_s5] sm:$0xff] %v421_v30 }
 0x27d   : > { %v601_v32 = vpop.f32.mrf.mxu1 }
 0x27e   : > { %779 = shalt.err (!%p776_p12)
}
 0x27f   : > { %s780_s20 = scalar_lea.hbm %s1043_s7, 128  ;;  %s784_s21 = scalar_lea.hbm %s1094_s3, 256 }
 0x280   : > { %p781_p1 = scmp.ne.s32.totalorder %s1043_s7, %s780_s20  ;;  %p785_p6 = scmp.lt.s32.totalorder %s1043_s7, %s1094_s3 }
 0x281   : > { %p786_p7 = scmp.lt.s32.totalorder %s784_s21, %s780_s20 }
 0x282   : > { %p782_p2 = pnand %p781_p1, %p933_p9 }
 0x283   : > { %p787_p8 = por %p786_p7, %p785_p6 }
 0x284   : > { %p783_p5 = pneg %p782_p2 }
 0x286   : > { %p788_p0 = pnand %p787_p8, %p783_p5 }
 0x288   : > { %791 = shalt.err (!%p788_p0)
}
 0x289   : > { %608 = dma.vmem_to_hbm [thread:$0]  (%p933_p9), %s1045_s10, 128, %s1043_s7, %s424_s15  }
 0x28a PF: > { %s450_s28 = sand.u32 1, %s830_s12   ;;  %p1109_p3 = scmp.ge.s32.totalorder %s850_s17, 2 }
 0x28b   : > { %s451_s30 = scalar_lea.sflag [#allocation7], %s450_s28 }
 0x28c   : > { %p621_p4 = pnand %p1109_p3, %p940_p11 }
 0x28e   : > { %p622_p10 = pneg %p621_p4 }
 0x290   : > { %825 = dma.done.wait (%p622_p10), %s451_s30, 128  }
 0x291   : > { %827 = vsyncadd (%p622_p10), %s451_s30, 4294967168  ;;  %s22_s17 = sadd.s32 1, %s850_s17   ;;  %s1110_s15 = sld [smem:[#allocation15_spill]] }
 0x292   : > { %p19_p13 = scmp.ge.s32.totalorder %s22_s17, 4   ;;  %s1111_s16 = sld [smem:[#allocation16_spill]] }
 0x293   : > { %s1112_s12 = smov %s834_s13  ;;  %s1113_s13 = smov %s838_s14 }
 0x294   : > { %s1114_s14 = smov %s938_s26  ;;  %21 = sbr.rel (!%p19_p13) target bundleno = 10 (0xa), region = 109 }
 0x299   :  { %456 = vsyncpa [#allocation6], 1 }
 0x29a   :  { %458 = vsyncpa [#allocation6 + $0x1], 1 }
 0x29b   :  { %459 = vsyncpa [#allocation9], 1 }
 0x29c   :  { %461 = vsyncpa [#allocation9 + $0x1], 1 }
 0x29d   :  { %462 = vsyncpa [#allocation7], 1 }
 0x29e   :  { %464 = vsyncpa [#allocation7 + $0x1], 1 }

</bundles_post_ra>
